<compile_context>
chip_gen: v5e
topology: v5e:2x2
jax: 0.10.0
libtpu: 0.0.40
codegen_flags: <defaults>
</compile_context>

<pallas_src>
import functools

import jax
import jax.numpy as jnp
import numpy as np
from jax.experimental import pallas as pl
from jax.experimental.pallas import tpu as pltpu


# ----------------------------------------------------------------------------
# Pallas kernel: depth-weighted 3x3 conv (DepthCNN2d) + bias + LeakyReLU(0.1)
# ----------------------------------------------------------------------------
def _depth_cnn_leaky_kernel(x_ref, d_ref, w_ref, b_ref, o_ref, *, wp):
    # x_ref : (1, C_in, S)      zero-padded input rows (width wp), flattened,
    #                           with a 2-row halo in front and enough extra
    #                           rows behind that every tap slice of length Pp
    #                           stays in bounds.
    # d_ref : (1, 1, S)         transformed depth, same slab layout.
    # w_ref : (9, C_out, C_in)  f32 weights, leading axis = tap index.
    # b_ref : (C_out, 1)        f32 bias.
    # o_ref : (1, C_out, Pp)    output on the padded (and lane-padded) grid.
    pp = o_ref.shape[2]

    # Flat offset of tap (ki, kj) for output flat position q:
    #   slab[q + (ki + 1) * wp + (kj - 1)]     (centre tap -> offset 2*wp)
    d_c = d_ref[0, :, pl.ds(2 * wp, pp)]                    # (1, Pp)

    # TODO(synk): derive the kj=0/2 taps from the kj=1 row load with
    # pltpu.roll(+-1) (wrap-around only touches discarded border lanes) once
    # the rotate direction is validated on-device; cuts unaligned loads 3x.
    acc = None
    f_sum = None
    for k in range(9):
        ki, kj = divmod(k, 3)
        off = (ki + 1) * wp + kj - 1
        xk = x_ref[0, :, pl.ds(off, pp)]                    # (C_in, Pp)
        if k == 4:
            # centre tap: diff == 0 exactly -> f_4 = 1; skip exp and multiply.
            xwk = xk
        else:
            diff = d_ref[0, :, pl.ds(off, pp)] - d_c        # (1, Pp)
            fk = jnp.exp(-(diff * diff))                    # EUP slot; in (0,1]
            f_sum = fk if f_sum is None else f_sum + fk
            xwk = xk * fk
        # tiny MXU push; the vex slot has huge slack at M=C_out, K=C_in
        t = jnp.dot(w_ref[k], xwk, preferred_element_type=jnp.float32)
        acc = t if acc is None else acc + t                 # (C_out, Pp) f32

    f_sum = f_sum + 1.0       # centre tap contributes exp(0)=1  -> f_sum >= 1
    inv = pl.reciprocal(f_sum, approx=True)                 # EUP slot; safe >= 1
    out = acc * (9.0 * inv) + b_ref[...]
    # LeakyReLU(negative_slope=0.1)
    o_ref[0] = jnp.where(out >= 0.0, out, 0.1 * out)


# ----------------------------------------------------------------------------
# Wrapper: RecurrentBlock.forward (depth_cnn branches)
# ----------------------------------------------------------------------------
def _nearest_up2(x):
    # nn.Upsample(scale_factor=2, mode='nearest') on NCHW
    x = jnp.repeat(x, 2, axis=2)
    x = jnp.repeat(x, 2, axis=3)
    return x


def recurrent_block_forward(inp, depth, w_param, bias, *, upsampling=False):
    """RecurrentBlock(downsampling/bottleneck/upsampling + depth_cnn) forward.

    inp     : (B, C_in, H, W)        float32, NCHW (PyTorch convention)
    depth   : (B, Cg,  H, W)         g_buffer; only the last channel is used
    w_param : (1, C_in*9, 1, C_out)  DepthCNN2d.weights
    bias    : (C_out,)               DepthCNN2d.bias
    """
    if upsampling:
        inp = _nearest_up2(inp)
        depth = _nearest_up2(depth)

    B, c_in, H, W = inp.shape
    c_out = w_param.shape[-1]
    Hp, Wp = H + 2, W + 2
    P = Hp * Wp                          # padded spatial grid (borders discarded)
    Pp = ((P + 127) // 128) * 128        # lane-dense width (multiple of 128)

    # depth transform: 2 * (g[:, -1:, :, :] - 0.5)
    d = 2.0 * (depth[:, -1:, :, :] - 0.5)                    # (B, 1, H, W)

    # One jnp.pad per stream builds the flat slab directly: 2 extra zero rows
    # on top give the front halo (2*Wp >= Wp+1) and `extra_bot` extra rows at
    # the bottom keep every tap slice of length Pp in bounds.
    extra_bot = -(-(Wp + 1 + (Pp - P)) // Wp)                # ceil division
    row_pad = (1 + 2, 1 + extra_bot)
    x_slab = jnp.pad(inp, ((0, 0), (0, 0), row_pad, (1, 1))).reshape(B, c_in, -1)
    d_slab = jnp.pad(d, ((0, 0), (0, 0), row_pad, (1, 1))).reshape(B, 1, -1)
    S = x_slab.shape[-1]

    # torch: out_unf = input_unf^T @ weights.view(c_out, -1)^T, with unfold
    # rows ordered j = c*9 + k.  Regroup weight columns tap-major so the
    # kernel indexes one (C_out, C_in) block per tap.
    w_mat = w_param.reshape(c_out, c_in * 9)                 # == weights.view(c_out, -1)
    w_taps = (w_mat.reshape(c_out, c_in, 9)
              .transpose(2, 0, 1)).astype(jnp.float32)       # (9, C_out, C_in)
    b2 = bias.reshape(c_out, 1).astype(jnp.float32)

    kern = functools.partial(_depth_cnn_leaky_kernel, wp=Wp)

    # TODO(synk): for production resolutions, add a grid axis over padded-row
    # chunks (1-row halo, rows_per_tile*Wp a multiple of 128) so per-step VMEM
    # stays inside v7x's 64 MiB and both its TensorCores get parallel work;
    # on v5e/v6e (128 MiB physical) raise vmem_limit_bytes before shrinking
    # tiles.  At the sizes used here whole-image-per-batch blocks are tiny.
    out_full = pl.pallas_call(
        kern,
        out_shape=jax.ShapeDtypeStruct((B, c_out, Pp), jnp.float32),
        grid=(B,),
        in_specs=[
            pl.BlockSpec((1, c_in, S), lambda b: (b, 0, 0)),
            pl.BlockSpec((1, 1, S), lambda b: (b, 0, 0)),
            pl.BlockSpec((9, c_out, c_in), lambda b: (0, 0, 0)),
            pl.BlockSpec((c_out, 1), lambda b: (0, 0)),
        ],
        out_specs=pl.BlockSpec((1, c_out, Pp), lambda b: (b, 0, 0)),
        compiler_params=pltpu.CompilerParams(
            dimension_semantics=("parallel",),
            vmem_limit_bytes=32 * 1024 * 1024,
        ),
    )(x_slab, d_slab, w_taps, b2)

    # drop the lane pad and the padded border rows/cols, back to NCHW
    out = out_full[:, :, :P].reshape(B, c_out, Hp, Wp)[:, :, 1:Hp - 1, 1:Wp - 1]
    return out


# ----------------------------------------------------------------------------
# Pure-JAX reference mirroring the torch code exactly (full f32 matmul)
# ----------------------------------------------------------------------------
def reference_forward(inp, g, w_param, bias, *, upsampling=False):
    if upsampling:
        inp = _nearest_up2(inp)
        g = _nearest_up2(g)
    B, c_in, H, W = inp.shape
    c_out = w_param.shape[-1]
    d = 2.0 * (g[:, -1:, :, :] - 0.5)

    def unfold(x):  # torch.nn.functional.unfold, kernel (3,3), padding (1,1)
        xp = jnp.pad(x, ((0, 0), (0, 0), (1, 1), (1, 1)))
        cols = []
        for c in range(x.shape[1]):
            for ki in range(3):
                for kj in range(3):
                    cols.append(xp[:, c, ki:ki + H, kj:kj + W].reshape(B, -1))
        return jnp.stack(cols, axis=1)                       # (B, C*9, L)

    input_unf = unfold(inp)                                  # (B, C_in*9, L)
    depth_unf = unfold(d)                                    # (B, 9, L)
    df = depth_unf.reshape(B, 1, 9, -1) - d.reshape(B, 1, 1, -1)
    df = (df ** 2).sum(axis=1)                               # (B, 9, L)
    wfe = jnp.exp(-df)
    wfe = 9.0 * wfe / wfe.sum(axis=1, keepdims=True)
    filt = input_unf.reshape(B, c_in, 9, -1) * wfe[:, None]
    input_unf = filt.reshape(B, c_in * 9, -1)
    # torch: weights.view(c_out, -1).t() == reshape(c_out, c_in*9).T
    w_mat = w_param.reshape(c_out, c_in * 9)
    out_unf = jnp.einsum('bjl,oj->bol', input_unf, w_mat,
                         precision=jax.lax.Precision.HIGHEST)
    out = out_unf.reshape(B, c_out, H, W) + bias.reshape(1, -1, 1, 1)
    return jnp.where(out >= 0.0, out, 0.1 * out)             # LeakyReLU(0.1)


# ----------------------------------------------------------------------------
if __name__ == "__main__":
    # RecurrentBlock(input_nc=4, output_nc=8, downsampling=True, depth_cnn=True)
    B, C_IN, C_OUT, H, W = 2, 4, 8, 16, 16

    key = jax.random.PRNGKey(0)
    k_inp, k_dep, k_w = jax.random.split(key, 3)

    inp = jax.random.normal(k_inp, (B, C_IN, H, W), dtype=jnp.float32)
    depth = jax.random.uniform(k_dep, (B, 1, H, W), dtype=jnp.float32)  # g_buffer in [0,1)

    # DepthCNN2d params: weights (1, C_in*9, 1, C_out) kaiming-uniform-style,
    # bias = 0 (deterministic, synthetic — no checkpoint load).
    wd = C_IN * 9
    bound = float(np.sqrt(6.0 / wd))
    w_param = jax.random.uniform(k_w, (1, wd, 1, C_OUT), dtype=jnp.float32,
                                 minval=-bound, maxval=bound)
    bias = jnp.zeros((C_OUT,), dtype=jnp.float32)

    fwd = jax.jit(functools.partial(recurrent_block_forward, upsampling=False))
    out = fwd(inp, depth, w_param, bias)
    out = jax.block_until_ready(out)

    ref = reference_forward(inp, depth, w_param, bias, upsampling=False)
    # Matmuls are f32 now; the remaining difference vs the exact reference is
    # the approximate EUP reciprocal (and exp implementation), so the previous
    # tolerance is comfortably sufficient.
    np.testing.assert_allclose(np.asarray(out), np.asarray(ref),
                               rtol=2e-2, atol=2e-2)

    # TODO(synk): non-depth_cnn branches of RecurrentBlock return None in the
    # reference module, so there is nothing to translate for them.
    print("KERNEL_OK")
</pallas_src>

<mosaic_0001>
module attributes {stable_mosaic.version = 11 : i64} {
  func.func @_depth_cnn_leaky_kernel(%arg0: i32, %arg1: memref<1x4x450xf32, #tpu.memory_space<vmem>>, %arg2: memref<1x1x450xf32, #tpu.memory_space<vmem>>, %arg3: memref<9x8x4xf32, #tpu.memory_space<vmem>>, %arg4: memref<8x1xf32, #tpu.memory_space<vmem>>, %arg5: memref<1x8x384xf32, #tpu.memory_space<vmem>>) attributes {dimension_semantics = [#tpu.dimension_semantics<parallel>], iteration_bounds = array<i64: 2>, scalar_prefetch = 0 : i64, scratch_operands = 0 : i64, tpu.core_type = #tpu.core_type<tc>, window_params = [{transform_indices = @transform_0, window_bounds = array<i64: 1, 4, 450>}, {transform_indices = @transform_1, window_bounds = array<i64: 1, 1, 450>}, {pipeline_mode = #tpu.pipeline_mode<synchronous>, transform_indices = @transform_2, window_bounds = array<i64: 9, 8, 4>}, {pipeline_mode = #tpu.pipeline_mode<synchronous>, transform_indices = @transform_3, window_bounds = array<i64: 8, 1>}, {transform_indices = @transform_4, window_bounds = array<i64: 1, 8, 384>}]} {
    %c0 = arith.constant 0 : index
    %c0_0 = arith.constant 0 : index
    %c36 = arith.constant 36 : index
    %0 = vector.load %arg2[%c0, %c0_0, %c36] : memref<1x1x450xf32, #tpu.memory_space<vmem>>, vector<1x1x384xf32>
    %1 = vector.shape_cast %0 : vector<1x1x384xf32> to vector<1x384xf32>
    %c0_1 = arith.constant 0 : index
    %c0_2 = arith.constant 0 : index
    %c17 = arith.constant 17 : index
    %2 = vector.load %arg1[%c0_1, %c0_2, %c17] : memref<1x4x450xf32, #tpu.memory_space<vmem>>, vector<1x4x384xf32>
    %3 = vector.shape_cast %2 : vector<1x4x384xf32> to vector<4x384xf32>
    %c0_3 = arith.constant 0 : index
    %c0_4 = arith.constant 0 : index
    %c17_5 = arith.constant 17 : index
    %4 = vector.load %arg2[%c0_3, %c0_4, %c17_5] : memref<1x1x450xf32, #tpu.memory_space<vmem>>, vector<1x1x384xf32>
    %5 = vector.shape_cast %4 : vector<1x1x384xf32> to vector<1x384xf32>
    %6 = arith.subf %5, %1 : vector<1x384xf32>
    %7 = arith.mulf %6, %6 : vector<1x384xf32>
    %cst = arith.constant 0.000000e+00 : f32
    %8 = vector.broadcast %cst : f32 to vector<1x384xf32>
    %9 = arith.subf %8, %7 : vector<1x384xf32>
    %10 = math.exp %9 : vector<1x384xf32>
    %11 = vector.broadcast %10 : vector<1x384xf32> to vector<4x384xf32>
    %12 = arith.mulf %3, %11 : vector<4x384xf32>
    %c0_6 = arith.constant 0 : index
    %c0_7 = arith.constant 0 : index
    %c0_8 = arith.constant 0 : index
    %13 = vector.load %arg3[%c0_6, %c0_7, %c0_8] : memref<9x8x4xf32, #tpu.memory_space<vmem>>, vector<1x8x4xf32>
    %14 = vector.shape_cast %13 : vector<1x8x4xf32> to vector<8x4xf32>
    %cst_9 = arith.constant dense<0.000000e+00> : vector<8x384xf32>
    %15 = tpu.matmul %14, %12, %cst_9 {dimension_numbers = #tpu.dot_dimension_numbers<[1], [0], [0], [1], [0, 0, 1, 1], [], []>} : vector<8x4xf32>, vector<4x384xf32>, vector<8x384xf32> -> vector<8x384xf32>
    %c0_10 = arith.constant 0 : index
    %c0_11 = arith.constant 0 : index
    %c18 = arith.constant 18 : index
    %16 = vector.load %arg1[%c0_10, %c0_11, %c18] : memref<1x4x450xf32, #tpu.memory_space<vmem>>, vector<1x4x384xf32>
    %17 = vector.shape_cast %16 : vector<1x4x384xf32> to vector<4x384xf32>
    %c0_12 = arith.constant 0 : index
    %c0_13 = arith.constant 0 : index
    %c18_14 = arith.constant 18 : index
    %18 = vector.load %arg2[%c0_12, %c0_13, %c18_14] : memref<1x1x450xf32, #tpu.memory_space<vmem>>, vector<1x1x384xf32>
    %19 = vector.shape_cast %18 : vector<1x1x384xf32> to vector<1x384xf32>
    %20 = arith.subf %19, %1 : vector<1x384xf32>
    %21 = arith.mulf %20, %20 : vector<1x384xf32>
    %cst_15 = arith.constant 0.000000e+00 : f32
    %22 = vector.broadcast %cst_15 : f32 to vector<1x384xf32>
    %23 = arith.subf %22, %21 : vector<1x384xf32>
    %24 = math.exp %23 : vector<1x384xf32>
    %25 = arith.addf %10, %24 : vector<1x384xf32>
    %26 = vector.broadcast %24 : vector<1x384xf32> to vector<4x384xf32>
    %27 = arith.mulf %17, %26 : vector<4x384xf32>
    %c1 = arith.constant 1 : index
    %c0_16 = arith.constant 0 : index
    %c0_17 = arith.constant 0 : index
    %28 = vector.load %arg3[%c1, %c0_16, %c0_17] : memref<9x8x4xf32, #tpu.memory_space<vmem>>, vector<1x8x4xf32>
    %29 = vector.shape_cast %28 : vector<1x8x4xf32> to vector<8x4xf32>
    %cst_18 = arith.constant dense<0.000000e+00> : vector<8x384xf32>
    %30 = tpu.matmul %29, %27, %cst_18 {dimension_numbers = #tpu.dot_dimension_numbers<[1], [0], [0], [1], [0, 0, 1, 1], [], []>} : vector<8x4xf32>, vector<4x384xf32>, vector<8x384xf32> -> vector<8x384xf32>
    %31 = arith.addf %15, %30 : vector<8x384xf32>
    %c0_19 = arith.constant 0 : index
    %c0_20 = arith.constant 0 : index
    %c19 = arith.constant 19 : index
    %32 = vector.load %arg1[%c0_19, %c0_20, %c19] : memref<1x4x450xf32, #tpu.memory_space<vmem>>, vector<1x4x384xf32>
    %33 = vector.shape_cast %32 : vector<1x4x384xf32> to vector<4x384xf32>
    %c0_21 = arith.constant 0 : index
    %c0_22 = arith.constant 0 : index
    %c19_23 = arith.constant 19 : index
    %34 = vector.load %arg2[%c0_21, %c0_22, %c19_23] : memref<1x1x450xf32, #tpu.memory_space<vmem>>, vector<1x1x384xf32>
    %35 = vector.shape_cast %34 : vector<1x1x384xf32> to vector<1x384xf32>
    %36 = arith.subf %35, %1 : vector<1x384xf32>
    %37 = arith.mulf %36, %36 : vector<1x384xf32>
    %cst_24 = arith.constant 0.000000e+00 : f32
    %38 = vector.broadcast %cst_24 : f32 to vector<1x384xf32>
    %39 = arith.subf %38, %37 : vector<1x384xf32>
    %40 = math.exp %39 : vector<1x384xf32>
    %41 = arith.addf %25, %40 : vector<1x384xf32>
    %42 = vector.broadcast %40 : vector<1x384xf32> to vector<4x384xf32>
    %43 = arith.mulf %33, %42 : vector<4x384xf32>
    %c2 = arith.constant 2 : index
    %c0_25 = arith.constant 0 : index
    %c0_26 = arith.constant 0 : index
    %44 = vector.load %arg3[%c2, %c0_25, %c0_26] : memref<9x8x4xf32, #tpu.memory_space<vmem>>, vector<1x8x4xf32>
    %45 = vector.shape_cast %44 : vector<1x8x4xf32> to vector<8x4xf32>
    %cst_27 = arith.constant dense<0.000000e+00> : vector<8x384xf32>
    %46 = tpu.matmul %45, %43, %cst_27 {dimension_numbers = #tpu.dot_dimension_numbers<[1], [0], [0], [1], [0, 0, 1, 1], [], []>} : vector<8x4xf32>, vector<4x384xf32>, vector<8x384xf32> -> vector<8x384xf32>
    %47 = arith.addf %31, %46 : vector<8x384xf32>
    %c0_28 = arith.constant 0 : index
    %c0_29 = arith.constant 0 : index
    %c35 = arith.constant 35 : index
    %48 = vector.load %arg1[%c0_28, %c0_29, %c35] : memref<1x4x450xf32, #tpu.memory_space<vmem>>, vector<1x4x384xf32>
    %49 = vector.shape_cast %48 : vector<1x4x384xf32> to vector<4x384xf32>
    %c0_30 = arith.constant 0 : index
    %c0_31 = arith.constant 0 : index
    %c35_32 = arith.constant 35 : index
    %50 = vector.load %arg2[%c0_30, %c0_31, %c35_32] : memref<1x1x450xf32, #tpu.memory_space<vmem>>, vector<1x1x384xf32>
    %51 = vector.shape_cast %50 : vector<1x1x384xf32> to vector<1x384xf32>
    %52 = arith.subf %51, %1 : vector<1x384xf32>
    %53 = arith.mulf %52, %52 : vector<1x384xf32>
    %cst_33 = arith.constant 0.000000e+00 : f32
    %54 = vector.broadcast %cst_33 : f32 to vector<1x384xf32>
    %55 = arith.subf %54, %53 : vector<1x384xf32>
    %56 = math.exp %55 : vector<1x384xf32>
    %57 = arith.addf %41, %56 : vector<1x384xf32>
    %58 = vector.broadcast %56 : vector<1x384xf32> to vector<4x384xf32>
    %59 = arith.mulf %49, %58 : vector<4x384xf32>
    %c3 = arith.constant 3 : index
    %c0_34 = arith.constant 0 : index
    %c0_35 = arith.constant 0 : index
    %60 = vector.load %arg3[%c3, %c0_34, %c0_35] : memref<9x8x4xf32, #tpu.memory_space<vmem>>, vector<1x8x4xf32>
    %61 = vector.shape_cast %60 : vector<1x8x4xf32> to vector<8x4xf32>
    %cst_36 = arith.constant dense<0.000000e+00> : vector<8x384xf32>
    %62 = tpu.matmul %61, %59, %cst_36 {dimension_numbers = #tpu.dot_dimension_numbers<[1], [0], [0], [1], [0, 0, 1, 1], [], []>} : vector<8x4xf32>, vector<4x384xf32>, vector<8x384xf32> -> vector<8x384xf32>
    %63 = arith.addf %47, %62 : vector<8x384xf32>
    %c0_37 = arith.constant 0 : index
    %c0_38 = arith.constant 0 : index
    %c36_39 = arith.constant 36 : index
    %64 = vector.load %arg1[%c0_37, %c0_38, %c36_39] : memref<1x4x450xf32, #tpu.memory_space<vmem>>, vector<1x4x384xf32>
    %65 = vector.shape_cast %64 : vector<1x4x384xf32> to vector<4x384xf32>
    %c4 = arith.constant 4 : index
    %c0_40 = arith.constant 0 : index
    %c0_41 = arith.constant 0 : index
    %66 = vector.load %arg3[%c4, %c0_40, %c0_41] : memref<9x8x4xf32, #tpu.memory_space<vmem>>, vector<1x8x4xf32>
    %67 = vector.shape_cast %66 : vector<1x8x4xf32> to vector<8x4xf32>
    %cst_42 = arith.constant dense<0.000000e+00> : vector<8x384xf32>
    %68 = tpu.matmul %67, %65, %cst_42 {dimension_numbers = #tpu.dot_dimension_numbers<[1], [0], [0], [1], [0, 0, 1, 1], [], []>} : vector<8x4xf32>, vector<4x384xf32>, vector<8x384xf32> -> vector<8x384xf32>
    %69 = arith.addf %63, %68 : vector<8x384xf32>
    %c0_43 = arith.constant 0 : index
    %c0_44 = arith.constant 0 : index
    %c37 = arith.constant 37 : index
    %70 = vector.load %arg1[%c0_43, %c0_44, %c37] : memref<1x4x450xf32, #tpu.memory_space<vmem>>, vector<1x4x384xf32>
    %71 = vector.shape_cast %70 : vector<1x4x384xf32> to vector<4x384xf32>
    %c0_45 = arith.constant 0 : index
    %c0_46 = arith.constant 0 : index
    %c37_47 = arith.constant 37 : index
    %72 = vector.load %arg2[%c0_45, %c0_46, %c37_47] : memref<1x1x450xf32, #tpu.memory_space<vmem>>, vector<1x1x384xf32>
    %73 = vector.shape_cast %72 : vector<1x1x384xf32> to vector<1x384xf32>
    %74 = arith.subf %73, %1 : vector<1x384xf32>
    %75 = arith.mulf %74, %74 : vector<1x384xf32>
    %cst_48 = arith.constant 0.000000e+00 : f32
    %76 = vector.broadcast %cst_48 : f32 to vector<1x384xf32>
    %77 = arith.subf %76, %75 : vector<1x384xf32>
    %78 = math.exp %77 : vector<1x384xf32>
    %79 = arith.addf %57, %78 : vector<1x384xf32>
    %80 = vector.broadcast %78 : vector<1x384xf32> to vector<4x384xf32>
    %81 = arith.mulf %71, %80 : vector<4x384xf32>
    %c5 = arith.constant 5 : index
    %c0_49 = arith.constant 0 : index
    %c0_50 = arith.constant 0 : index
    %82 = vector.load %arg3[%c5, %c0_49, %c0_50] : memref<9x8x4xf32, #tpu.memory_space<vmem>>, vector<1x8x4xf32>
    %83 = vector.shape_cast %82 : vector<1x8x4xf32> to vector<8x4xf32>
    %cst_51 = arith.constant dense<0.000000e+00> : vector<8x384xf32>
    %84 = tpu.matmul %83, %81, %cst_51 {dimension_numbers = #tpu.dot_dimension_numbers<[1], [0], [0], [1], [0, 0, 1, 1], [], []>} : vector<8x4xf32>, vector<4x384xf32>, vector<8x384xf32> -> vector<8x384xf32>
    %85 = arith.addf %69, %84 : vector<8x384xf32>
    %c0_52 = arith.constant 0 : index
    %c0_53 = arith.constant 0 : index
    %c53 = arith.constant 53 : index
    %86 = vector.load %arg1[%c0_52, %c0_53, %c53] : memref<1x4x450xf32, #tpu.memory_space<vmem>>, vector<1x4x384xf32>
    %87 = vector.shape_cast %86 : vector<1x4x384xf32> to vector<4x384xf32>
    %c0_54 = arith.constant 0 : index
    %c0_55 = arith.constant 0 : index
    %c53_56 = arith.constant 53 : index
    %88 = vector.load %arg2[%c0_54, %c0_55, %c53_56] : memref<1x1x450xf32, #tpu.memory_space<vmem>>, vector<1x1x384xf32>
    %89 = vector.shape_cast %88 : vector<1x1x384xf32> to vector<1x384xf32>
    %90 = arith.subf %89, %1 : vector<1x384xf32>
    %91 = arith.mulf %90, %90 : vector<1x384xf32>
    %cst_57 = arith.constant 0.000000e+00 : f32
    %92 = vector.broadcast %cst_57 : f32 to vector<1x384xf32>
    %93 = arith.subf %92, %91 : vector<1x384xf32>
    %94 = math.exp %93 : vector<1x384xf32>
    %95 = arith.addf %79, %94 : vector<1x384xf32>
    %96 = vector.broadcast %94 : vector<1x384xf32> to vector<4x384xf32>
    %97 = arith.mulf %87, %96 : vector<4x384xf32>
    %c6 = arith.constant 6 : index
    %c0_58 = arith.constant 0 : index
    %c0_59 = arith.constant 0 : index
    %98 = vector.load %arg3[%c6, %c0_58, %c0_59] : memref<9x8x4xf32, #tpu.memory_space<vmem>>, vector<1x8x4xf32>
    %99 = vector.shape_cast %98 : vector<1x8x4xf32> to vector<8x4xf32>
    %cst_60 = arith.constant dense<0.000000e+00> : vector<8x384xf32>
    %100 = tpu.matmul %99, %97, %cst_60 {dimension_numbers = #tpu.dot_dimension_numbers<[1], [0], [0], [1], [0, 0, 1, 1], [], []>} : vector<8x4xf32>, vector<4x384xf32>, vector<8x384xf32> -> vector<8x384xf32>
    %101 = arith.addf %85, %100 : vector<8x384xf32>
    %c0_61 = arith.constant 0 : index
    %c0_62 = arith.constant 0 : index
    %c54 = arith.constant 54 : index
    %102 = vector.load %arg1[%c0_61, %c0_62, %c54] : memref<1x4x450xf32, #tpu.memory_space<vmem>>, vector<1x4x384xf32>
    %103 = vector.shape_cast %102 : vector<1x4x384xf32> to vector<4x384xf32>
    %c0_63 = arith.constant 0 : index
    %c0_64 = arith.constant 0 : index
    %c54_65 = arith.constant 54 : index
    %104 = vector.load %arg2[%c0_63, %c0_64, %c54_65] : memref<1x1x450xf32, #tpu.memory_space<vmem>>, vector<1x1x384xf32>
    %105 = vector.shape_cast %104 : vector<1x1x384xf32> to vector<1x384xf32>
    %106 = arith.subf %105, %1 : vector<1x384xf32>
    %107 = arith.mulf %106, %106 : vector<1x384xf32>
    %cst_66 = arith.constant 0.000000e+00 : f32
    %108 = vector.broadcast %cst_66 : f32 to vector<1x384xf32>
    %109 = arith.subf %108, %107 : vector<1x384xf32>
    %110 = math.exp %109 : vector<1x384xf32>
    %111 = arith.addf %95, %110 : vector<1x384xf32>
    %112 = vector.broadcast %110 : vector<1x384xf32> to vector<4x384xf32>
    %113 = arith.mulf %103, %112 : vector<4x384xf32>
    %c7 = arith.constant 7 : index
    %c0_67 = arith.constant 0 : index
    %c0_68 = arith.constant 0 : index
    %114 = vector.load %arg3[%c7, %c0_67, %c0_68] : memref<9x8x4xf32, #tpu.memory_space<vmem>>, vector<1x8x4xf32>
    %115 = vector.shape_cast %114 : vector<1x8x4xf32> to vector<8x4xf32>
    %cst_69 = arith.constant dense<0.000000e+00> : vector<8x384xf32>
    %116 = tpu.matmul %115, %113, %cst_69 {dimension_numbers = #tpu.dot_dimension_numbers<[1], [0], [0], [1], [0, 0, 1, 1], [], []>} : vector<8x4xf32>, vector<4x384xf32>, vector<8x384xf32> -> vector<8x384xf32>
    %117 = arith.addf %101, %116 : vector<8x384xf32>
    %c0_70 = arith.constant 0 : index
    %c0_71 = arith.constant 0 : index
    %c55 = arith.constant 55 : index
    %118 = vector.load %arg1[%c0_70, %c0_71, %c55] : memref<1x4x450xf32, #tpu.memory_space<vmem>>, vector<1x4x384xf32>
    %119 = vector.shape_cast %118 : vector<1x4x384xf32> to vector<4x384xf32>
    %c0_72 = arith.constant 0 : index
    %c0_73 = arith.constant 0 : index
    %c55_74 = arith.constant 55 : index
    %120 = vector.load %arg2[%c0_72, %c0_73, %c55_74] : memref<1x1x450xf32, #tpu.memory_space<vmem>>, vector<1x1x384xf32>
    %121 = vector.shape_cast %120 : vector<1x1x384xf32> to vector<1x384xf32>
    %122 = arith.subf %121, %1 : vector<1x384xf32>
    %123 = arith.mulf %122, %122 : vector<1x384xf32>
    %cst_75 = arith.constant 0.000000e+00 : f32
    %124 = vector.broadcast %cst_75 : f32 to vector<1x384xf32>
    %125 = arith.subf %124, %123 : vector<1x384xf32>
    %126 = math.exp %125 : vector<1x384xf32>
    %127 = arith.addf %111, %126 : vector<1x384xf32>
    %128 = vector.broadcast %126 : vector<1x384xf32> to vector<4x384xf32>
    %129 = arith.mulf %119, %128 : vector<4x384xf32>
    %c8 = arith.constant 8 : index
    %c0_76 = arith.constant 0 : index
    %c0_77 = arith.constant 0 : index
    %130 = vector.load %arg3[%c8, %c0_76, %c0_77] : memref<9x8x4xf32, #tpu.memory_space<vmem>>, vector<1x8x4xf32>
    %131 = vector.shape_cast %130 : vector<1x8x4xf32> to vector<8x4xf32>
    %cst_78 = arith.constant dense<0.000000e+00> : vector<8x384xf32>
    %132 = tpu.matmul %131, %129, %cst_78 {dimension_numbers = #tpu.dot_dimension_numbers<[1], [0], [0], [1], [0, 0, 1, 1], [], []>} : vector<8x4xf32>, vector<4x384xf32>, vector<8x384xf32> -> vector<8x384xf32>
    %133 = arith.addf %117, %132 : vector<8x384xf32>
    %cst_79 = arith.constant 1.000000e+00 : f32
    %134 = vector.broadcast %cst_79 : f32 to vector<1x384xf32>
    %135 = arith.addf %127, %134 : vector<1x384xf32>
    %136 = tpu.reciprocal %135 {approx = true} : vector<1x384xf32> -> vector<1x384xf32>
    %cst_80 = arith.constant 9.000000e+00 : f32
    %137 = vector.broadcast %cst_80 : f32 to vector<1x384xf32>
    %138 = arith.mulf %137, %136 : vector<1x384xf32>
    %139 = vector.broadcast %138 : vector<1x384xf32> to vector<8x384xf32>
    %140 = arith.mulf %133, %139 : vector<8x384xf32>
    %c0_81 = arith.constant 0 : index
    %c0_82 = arith.constant 0 : index
    %141 = vector.load %arg4[%c0_81, %c0_82] : memref<8x1xf32, #tpu.memory_space<vmem>>, vector<8x1xf32>
    %142 = vector.broadcast %141 : vector<8x1xf32> to vector<8x384xf32>
    %143 = arith.addf %140, %142 : vector<8x384xf32>
    %cst_83 = arith.constant 0.000000e+00 : f32
    %144 = vector.broadcast %cst_83 : f32 to vector<8x384xf32>
    %145 = arith.cmpf oge, %143, %144 : vector<8x384xf32>
    %cst_84 = arith.constant 1.000000e-01 : f32
    %146 = vector.broadcast %cst_84 : f32 to vector<8x384xf32>
    %147 = arith.mulf %146, %143 : vector<8x384xf32>
    %148 = arith.select %145, %143, %147 : vector<8x384xi1>, vector<8x384xf32>
    %c0_85 = arith.constant 0 : index
    %c0_86 = arith.constant 0 : index
    %c0_87 = arith.constant 0 : index
    %149 = vector.load %arg5[%c0_85, %c0_86, %c0_87] : memref<1x8x384xf32, #tpu.memory_space<vmem>>, vector<1x8x384xf32>
    %150 = vector.shape_cast %149 : vector<1x8x384xf32> to vector<8x384xf32>
    %151 = vector.shape_cast %148 : vector<8x384xf32> to vector<1x8x384xf32>
    tpu.vector_store %arg5[%c0_85, %c0_86, %c0_87], %151 {strides = array<i32>} : memref<1x8x384xf32, #tpu.memory_space<vmem>>, vector<1x8x384xf32>,
    return
  }
  func.func @transform_0(%arg0: i32) -> (i32, i32, i32) {
    %c0_i32 = arith.constant 0 : i32
    %c0_i32_0 = arith.constant 0 : i32
    %c0_i32_1 = arith.constant 0 : i32
    return %arg0, %c0_i32, %c0_i32_0 : i32, i32, i32
  }
  func.func @transform_1(%arg0: i32) -> (i32, i32, i32) {
    %c0_i32 = arith.constant 0 : i32
    %c0_i32_0 = arith.constant 0 : i32
    %c0_i32_1 = arith.constant 0 : i32
    return %arg0, %c0_i32, %c0_i32_0 : i32, i32, i32
  }
  func.func @transform_2(%arg0: i32) -> (i32, i32, i32) {
    %c0_i32 = arith.constant 0 : i32
    %c0_i32_0 = arith.constant 0 : i32
    %c0_i32_1 = arith.constant 0 : i32
    %c0_i32_2 = arith.constant 0 : i32
    return %c0_i32, %c0_i32_0, %c0_i32_1 : i32, i32, i32
  }
  func.func @transform_3(%arg0: i32) -> (i32, i32) {
    %c0_i32 = arith.constant 0 : i32
    %c0_i32_0 = arith.constant 0 : i32
    %c0_i32_1 = arith.constant 0 : i32
    return %c0_i32, %c0_i32_0 : i32, i32
  }
  func.func @transform_4(%arg0: i32) -> (i32, i32, i32) {
    %c0_i32 = arith.constant 0 : i32
    %c0_i32_0 = arith.constant 0 : i32
    %c0_i32_1 = arith.constant 0 : i32
    return %arg0, %c0_i32, %c0_i32_0 : i32, i32, i32
  }
}

</mosaic_0001>

<bundles_post_ra>
// kernel: recurrent_block_forward.1
= control target key start
LH: loop header
LB: loop body
LE: loop exit
PB: predicated region body
PF: predicated region fallthrough
CT: control target
= control target key end

     0   :  { %s1608_s15 = smov 0   ;;  %s1888_s0 = inlined_call_operand.vmem [shape: f32[2,4,450], index: 0, kind: input, shape index: {}]   ;;  %s1889_s1 = inlined_call_operand.vmem [shape: f32[2,1,450], index: 1, kind: input, shape index: {}]   ;;  %s1890_s2 = inlined_call_operand.vmem [shape: f32[9,8,4], index: 2, kind: input, shape index: {}]   ;;  %s1891_s3 = inlined_call_operand.vmem [shape: f32[8,1], index: 3, kind: input, shape index: {}]   ;;  %s1892_s4 = inlined_call_operand.vmem [shape: f32[2,8,384], index: 4, kind: output, shape index: {}]  }
   0x1 LB: > { %s1436_s16 = sadd.s32 4294967295, %s1563_s15   ;;  %p1440_p0 = scmp.ge.s32.totalorder %s1563_s15, 1  ;;  %s1563_s15 = sphi %s1608_s15, %s14_s15  }
   0x2   : > { %p171_p1 = scmp.lt.s32.totalorder %s1563_s15, 3 }
   0x4   : > { %p172_p2 = pnand %p1440_p0, %p171_p1 }
   0x5   : > { %p201_p3 = scmp.lt.s32.totalorder (!%p172_p2), %s1436_s16, 1  ;;  %s1565_s21 = smov (!%p172_p2), 110  }
   0x6   : > { %175 = sbr.rel (%p172_p2) target bundleno = 540 (0x21c), region = 36  ;;  %s1566_s22 = smov (!%p172_p2), 111  }
   0x7   : > { %s1567_s23 = smov (!%p172_p2), 1   ;;  %s1568_s24 = smov (!%p172_p2), 109  }
   0x8   : > { %s1569_s25 = smov (!%p172_p2), 127   ;;  %s1570_s26 = smov (!%p172_p2), 17  }
   0x9   : > { %s1571_s27 = smov (!%p172_p2), 18   ;;  %s1572_s28 = smov (!%p172_p2), 19  }
   0xa   : > { %s1573_s7 = smov (!%p172_p2), 93   ;;  %s1574_s8 = smov (!%p172_p2), 92  }
   0xb   : > { %s1894_s16 = smov (!%p201_p3, %s1436_s16), 1  ;;  %vm248_vm0 = vcmask 900096   ;;  %vm385_vm1 = vcmask 908288   ;;  %vm222_vm2 = vcmask 891904   ;;  %vm260_vm3 = vcmask 1039360   ;;  %s1575_s9 = smov 91  }
   0xc   : > { %s1443_s17 = sshll.u32 %s1894_s16, 2  ;;  %s1509_s29 = sshll.u32 %s1894_s16, 4  ;;  %vm815_vm4 = vcmask 7168   ;;  %vm237_vm5 = vcmask 1043456   ;;  %vm944_vm6 = vcmask 138240   ;;  %vm1072_vm7 = vcmask 146432  }
   0xd   : > { %s1622_s20 = scalar_lea.vmem %s1889_s1, %s1443_s17  ;;  %s205_s6 = scalar_lea.vmem %s1888_s0, %s1509_s29  ;;  %vm1200_vm8 = vcmask 154624   ;;  %vm298_vm9 = vcmask 31744   ;;  %vm636_vm10 = vcmask 760832   ;;  %vm733_vm11 = vcmask 752640  }
   0xe   : > { %v215_v0 = vld [vmem:[%s1622_s20] sm:$0xf]  ;;  %v1648_v42 = vld [vmem:[%s205_s6 + $0x8] sm:$0xff]  ;;  %s1576_s10 = smov 75   ;;  %s1577_s11 = smov 74   ;;  %vm862_vm12 = vcmask 744448  }
   0xf   : > { %245 = vrot.lane.b32.xlu0 %v215_v0, %s1565_s21  ;;  %461 = vrot.lane.b32.xlu1 %v215_v0, %s1566_s22  ;;  %v460_v4 = vld [vmem:[%s1622_s20] sm:$0xf]  ;;  %s1578_s12 = smov 73   ;;  %s1579_s13 = smov 126   ;;  %vm1118_vm13 = vcmask 605184   ;;  %vm990_vm14 = vcmask 613376  }
  0x10   : > { %812 = vrot.lane.b32.xlu2 %v215_v0, %s1567_s23  ;;  %v587_v16 = vld [vmem:[%s1622_s20] sm:$0xf]  ;;  %s1580_s14 = smov 108   ;;  %s1581_s19 = smov 90   ;;  %vm1247_vm15 = vcmask 596992  }
  0x11   : > { %v811_v35 = vld [vmem:[%s1622_s20] sm:$0xf] }
  0x12   : > { %v1646_v41 = vld [vmem:[%s205_s6] sm:$0xff] }
  0x13   : > { %v940_v62 = vld [vmem:[%s1622_s20] sm:$0xf] }
  0x17   : > { %219 = vrot.lane.b32.xlu0 %v215_v0, %s1568_s24  ;;  %588 = vrot.lane.b32.xlu1 %v215_v0, %s1569_s25 }
  0x18   : > { %941 = vrot.lane.b32.xlu2 %v215_v0, %s1570_s26 }
  0x1f   : > { %1069 = vrot.lane.b32.xlu0 %v215_v0, %s1571_s27  ;;  %1197 = vrot.lane.b32.xlu1 %v215_v0, %s1572_s28 }
  0x6a   : > { %v813_v24 = vpop.permute.xlu2 %812 }
  0x6b   : > { %v814_v29 = vrot.slane %v813_v24, 7 }
  0x6d   : > { %v816_v36 = vsel %vm815_vm4, %v814_v29, %v813_v24  ;;  %vm827_vm4 = vcmask 883712  }
  0x6e   : > { %v818_v47 = vsub.f32 %v811_v35, %v816_v36 }
  0x70   : > { %v819_v55 = vmul.f32 %v818_v47, %v818_v47 }
  0x72   : > { %v942_v43 = vpop.permute.xlu2 %941 }
  0x73   : > { %v943_v50 = vrot.slane %v942_v43, 7 }
  0x75   : > { %v945_v57 = vsel %vm944_vm6, %v943_v50, %v942_v43 }
  0x81   : > { %v246_v1 = vpop.permute.xlu0 %245  ;;  %v462_v2 = vpop.permute.xlu1 %461 }
  0x82   : > { %v247_v3 = vrot.slane %v246_v1, 1  ;;  %v463_v5 = vrot.slane %v462_v2, 1 }
  0x84   : > { %v249_v6 = vsel %vm248_vm0, %v246_v1, %v247_v3  ;;  %v464_v7 = vsel %vm385_vm1, %v462_v2, %v463_v5  ;;  %v820_v3 = vsub.f32 0.0, %v819_v55 }
  0x85   : > { %v251_v8 = vsub.f32 %v215_v0, %v249_v6  ;;  %v466_v9 = vsub.f32 %v460_v4, %v464_v7  ;;  %v947_v7 = vsub.f32 %v940_v62, %v945_v57 }
  0x87   : > { %v252_v10 = vmul.f32 %v251_v8, %v251_v8  ;;  %v467_v11 = vmul.f32 %v466_v9, %v466_v9 }
  0x89   : > { %v253_v12 = vsub.f32 0.0, %v252_v10  ;;  %v220_v13 = vpop.permute.xlu0 %219  ;;  %v589_v14 = vpop.permute.xlu1 %588  ;;  %v468_v20 = vsub.f32 0.0, %v467_v11 }
  0x8a   : > { %v221_v15 = vrot.slane %v220_v13, 1  ;;  %v590_v17 = vrot.slane %v589_v14, 1 }
  0x8b   : > { %v254_v18 = vmul.f32 1.442695, %v253_v12  ;;  %v469_v26 = vmul.f32 1.442695, %v468_v20  ;;  %v1068_v20 = vld [vmem:[%s1622_s20] sm:$0xf] }
  0x8c   : > { %v223_v19 = vsel %vm222_vm2, %v220_v13, %v221_v15  ;;  %v591_v21 = vsel %vm260_vm3, %v589_v14, %v590_v17  ;;  %v948_v17 = vmul.f32 %v947_v7, %v947_v7 }
  0x8d   : > { %1539 = vpow2.f32 %v254_v18  ;;  %v225_v22 = vsub.f32 %v215_v0, %v223_v19  ;;  %v593_v23 = vsub.f32 %v587_v16, %v591_v21  ;;  %v821_v19 = vmul.f32 1.442695, %v820_v3 }
  0x8e   : > { %1541 = vpow2.f32 %v469_v26 }
  0x8f   : > { %v226_v25 = vmul.f32 %v225_v22, %v225_v22  ;;  %v594_v27 = vmul.f32 %v593_v23, %v593_v23 }
  0x91   : > { %v227_v28 = vsub.f32 0.0, %v226_v25  ;;  %v595_v34 = vsub.f32 0.0, %v594_v27  ;;  %v1070_v18 = vpop.permute.xlu0 %1069 }
  0x92   : > { %v1071_v21 = vrot.slane %v1070_v18, 7 }
  0x93   : > { %v1636_v30 = vpop.eup %1539  ;;  %v228_v31 = vmul.f32 1.442695, %v227_v28  ;;  %v596_v46 = vmul.f32 1.442695, %v595_v34  ;;  %v949_v28 = vsub.f32 0.0, %v948_v17 }
  0x94   : > { %v265_v32 = vperm.slane %v1636_v30, 1  ;;  %v267_v33 = vperm.slane %v1636_v30, 3  ;;  %v264_v37 = vperm.slane %v1636_v30, 0  ;;  %v266_v38 = vperm.slane %v1636_v30, 2  ;;  %v1654_v51 = vpop.eup %1541 }
  0x95   : > { %1543 = vpow2.f32 %v228_v31  ;;  %v482_v56 = vperm.slane %v1654_v51, 3  ;;  %v480_v63 = vperm.slane %v1654_v51, 1  ;;  %v481_v0 = vperm.slane %v1654_v51, 2 }
  0x96   : > { %v268_v39 = vrot.slane %v265_v32, 4  ;;  %v269_v40 = vrot.slane %v267_v33, 4  ;;  %1545 = vpow2.f32 %v596_v46  ;;  %v479_v12 = vperm.slane %v1654_v51, 0 }
  0x97   : > { %v484_v4 = vrot.slane %v482_v56, 4  ;;  %v483_v13 = vrot.slane %v480_v63, 4  ;;  %v1073_v25 = vsel %vm1072_vm7, %v1071_v21, %v1070_v18  ;;  %1547 = vpow2.f32 %v821_v19 }
  0x98   : > { %v270_v44 = vsel %vm237_vm5, %v264_v37, %v268_v39  ;;  %v271_v45 = vsel %vm237_vm5, %v266_v38, %v269_v40  ;;  %v1075_v29 = vsub.f32 %v1068_v20, %v1073_v25  ;;  %v1198_v39 = vpop.permute.xlu1 %1197  ;;  %v950_v43 = vmul.f32 1.442695, %v949_v28 }
  0x99   : > { %v275_v48 = vmul.f32 %v1648_v42, %v271_v45  ;;  %v274_v49 = vmul.f32 %v1646_v41, %v270_v44  ;;  %v486_v16 = vsel %vm237_vm5, %v481_v0, %v484_v4  ;;  %v485_v23 = vsel %vm237_vm5, %v479_v12, %v483_v13  ;;  %v1196_v44 = vld [vmem:[%s1622_s20] sm:$0xf] }
  0x9a   : > { %v490_v24 = vmul.f32 %v1648_v42, %v486_v16  ;;  %v489_v35 = vmul.f32 %v1646_v41, %v485_v23  ;;  %v1076_v38 = vmul.f32 %v1075_v29, %v1075_v29  ;;  %v1199_v45 = vrot.slane %v1198_v39, 7 }
  0x9b   : > { %v1656_v52 = vpop.eup %1543  ;;  %282 = vst [vmem:[#allocation1 + $0x10] ss:$2 sm:$0xff] %v275_v48  ;;  %1549 = vpow2.f32 %v950_v43 }
  0x9c   : > { %v232_v53 = vperm.slane %v1656_v52, 1  ;;  %v234_v54 = vperm.slane %v1656_v52, 3  ;;  %280 = vst [vmem:[#allocation1] ss:$2 sm:$0xff] %v274_v49  ;;  %v231_v58 = vperm.slane %v1656_v52, 0  ;;  %v233_v59 = vperm.slane %v1656_v52, 2  ;;  %v1670_v8 = vpop.eup %1545 }
  0x9d   : > { %v608_v15 = vperm.slane %v1670_v8, 3  ;;  %v606_v22 = vperm.slane %v1670_v8, 1  ;;  %v607_v26 = vperm.slane %v1670_v8, 2  ;;  %v605_v33 = vperm.slane %v1670_v8, 0  ;;  %v1690_v46 = vpop.eup %1547 }
  0x9e   : > { %v235_v60 = vrot.slane %v232_v53, 4  ;;  %v236_v61 = vrot.slane %v234_v54, 4  ;;  %v1077_v49 = vsub.f32 0.0, %v1076_v38  ;;  %v1201_v50 = vsel %vm1200_vm8, %v1199_v45, %v1198_v39 }
  0x9f   : > { %v610_v27 = vrot.slane %v608_v15, 4  ;;  %v609_v34 = vrot.slane %v606_v22, 4  ;;  %v1203_v55 = vsub.f32 %v1196_v44, %v1201_v50  ;;  %v834_v57 = vperm.slane %v1690_v46, 3 }
  0xa0   : > { %v239_v1 = vsel %vm237_vm5, %v233_v59, %v236_v61  ;;  %v238_v2 = vsel %vm237_vm5, %v231_v58, %v235_v60  ;;  %v832_v60 = vperm.slane %v1690_v46, 1  ;;  %v1078_v62 = vmul.f32 1.442695, %v1077_v49 }
  0xa1   : > { %v243_v5 = vmul.f32 %v1648_v42, %v239_v1  ;;  %v242_v6 = vmul.f32 %v1646_v41, %v238_v2  ;;  %v612_v40 = vsel %vm237_vm5, %v607_v26, %v610_v27  ;;  %v611_v47 = vsel %vm237_vm5, %v605_v33, %v609_v34  ;;  %v1700_v63 = vpop.eup %1549 }
  0xa2   : > { %v286_v9 = vld.sshfl [vmem:[#allocation1 + $0x18] sm:$0xff pattern:$0x75316420]  ;;  %v285_v10 = vld.sshfl [vmem:[#allocation1 + $0x10] sm:$0xff pattern:$0x75316420]  ;;  %v616_v48 = vmul.f32 %v612_v40, %v1648_v42  ;;  %v615_v56 = vmul.f32 %v611_v47, %v1646_v41  ;;  %v1204_v61 = vmul.f32 %v1203_v55, %v1203_v55  ;;  %1551 = vpow2.f32 %v1078_v62 }
  0xa3   : > { %293 = vrot.lane.b32.xlu0 %v286_v9, %s1565_s21  ;;  %291 = vrot.lane.b32.xlu2 %v285_v10, %s1565_s21  ;;  %372 = vst [vmem:[#allocation1 + $0x10] ss:$2 sm:$0xff] %v243_v5  ;;  %v283_v11 = vld.sshfl [vmem:[#allocation1] sm:$0xff pattern:$0x75316420]  ;;  %v833_v0 = vperm.slane %v1690_v46, 2 }
  0xa4   : > { %287 = vrot.lane.b32.xlu1 %v283_v11, %s1565_s21  ;;  %v284_v14 = vld.sshfl [vmem:[#allocation1 + $0x8] sm:$0xff pattern:$0x75316420]  ;;  %v836_v1 = vrot.slane %v834_v57, 4  ;;  %v831_v2 = vperm.slane %v1690_v46, 0  ;;  %v835_v3 = vrot.slane %v832_v60, 4 }
  0xa5   : > { %370 = vst [vmem:[#allocation1] ss:$2 sm:$0xff] %v242_v6  ;;  %v1205_v4 = vsub.f32 0.0, %v1204_v61  ;;  %v962_v7 = vperm.slane %v1700_v63, 3  ;;  %v960_v12 = vperm.slane %v1700_v63, 1  ;;  %v961_v17 = vperm.slane %v1700_v63, 2 }
  0xa6   : > { %v838_v9 = vsel %vm237_vm5, %v833_v0, %v836_v1  ;;  %v837_v13 = vsel %vm237_vm5, %v831_v2, %v835_v3  ;;  %v959_v20 = vperm.slane %v1700_v63, 0 }
  0xa7   : > { %v842_v15 = vmul.f32 %v838_v9, %v1648_v42  ;;  %v964_v18 = vrot.slane %v962_v7, 4  ;;  %v841_v19 = vmul.f32 %v837_v13, %v1646_v41  ;;  %v963_v21 = vrot.slane %v960_v12, 4 }
  0xa8   : > { %v1714_v16 = vpop.eup %1551 }
  0xa9   : > { %v966_v25 = vsel %vm237_vm5, %v961_v17, %v964_v18  ;;  %v1088_v28 = vperm.slane %v1714_v16, 1  ;;  %v965_v29 = vsel %vm237_vm5, %v959_v20, %v963_v21  ;;  %v1089_v33 = vperm.slane %v1714_v16, 2  ;;  %v244_v17 = vld [vmem:[%s1890_s2] sm:$0xff] }
  0xaa   : > { %v376_v31 = vld.sshfl [vmem:[#allocation1 + $0x18] sm:$0xff pattern:$0x75316420]  ;;  %v375_v32 = vld.sshfl [vmem:[#allocation1 + $0x10] sm:$0xff pattern:$0x75316420] }
  0xab   : > { %289 = vrot.lane.b32.xlu2 %v284_v14, %s1565_s21  ;;  %497 = vst [vmem:[#allocation1 + $0x10] ss:$2 sm:$0xff] %v490_v24  ;;  %v1206_v14 = vmul.f32 1.442695, %v1205_v4  ;;  %v1090_v24 = vperm.slane %v1714_v16, 3 }
  0xac   : > { %v374_v36 = vld.sshfl [vmem:[#allocation1 + $0x8] sm:$0xff pattern:$0x75316420]  ;;  %v373_v37 = vld.sshfl [vmem:[#allocation1] sm:$0xff pattern:$0x75316420] }
  0xad   : > { %379 = vrot.lane.b32.xlu1 %v374_v36, %s1566_s22  ;;  %377 = vrot.lane.b32.xlu0 %v373_v37, %s1566_s22  ;;  %495 = vst [vmem:[#allocation1] ss:$2 sm:$0xff] %v489_v35  ;;  %1553 = vpow2.f32 %v1206_v14  ;;  %v1092_v34 = vrot.slane %v1090_v24, 4  ;;  %v969_v35 = vmul.f32 %v965_v29, %v1646_v41  ;;  %v1087_v36 = vperm.slane %v1714_v16, 0 }
  0xae   : > { %v1091_v37 = vrot.slane %v1088_v28, 4 }
  0xaf   : > { %v1094_v43 = vsel %vm237_vm5, %v1089_v33, %v1092_v34  ;;  %v1465_v33 = vld [vmem:[%s1890_s2 + $0x18] sm:$0xff] }
  0xb0   : > { %v1098_v49 = vmul.f32 %v1094_v43, %v1648_v42 }
  0xb2   : > { %v500_v53 = vld.sshfl [vmem:[#allocation1 + $0x10] sm:$0xff pattern:$0x75316420]  ;;  %v501_v54 = vld.sshfl [vmem:[#allocation1 + $0x18] sm:$0xff pattern:$0x75316420] }
  0xb3   : > { %383 = vrot.lane.b32.xlu2 %v376_v31, %s1566_s22  ;;  %623 = vst [vmem:[#allocation1 + $0x10] ss:$2 sm:$0xff] %v616_v48  ;;  %v970_v31 = vmul.f32 %v966_v25, %v1648_v42  ;;  %v1093_v48 = vsel %vm237_vm5, %v1087_v36, %v1091_v37  ;;  %v1458_v25 = vld [vmem:[%s1890_s2 + $0x10] sm:$0xff] }
  0xb4   : > { %v499_v58 = vld.sshfl [vmem:[#allocation1 + $0x8] sm:$0xff pattern:$0x75316420]  ;;  %v498_v59 = vld.sshfl [vmem:[#allocation1] sm:$0xff pattern:$0x75316420] }
  0xb5   : > { %381 = vrot.lane.b32.xlu1 %v375_v32, %s1566_s22  ;;  %504 = vrot.lane.b32.xlu0 %v499_v58, %s1568_s24  ;;  %621 = vst [vmem:[#allocation1] ss:$2 sm:$0xff] %v615_v56  ;;  %v1727_v32 = vpop.eup %1553 }
  0xb6   : > { %v1219_v40 = vperm.slane %v1727_v32, 3  ;;  %v1217_v47 = vperm.slane %v1727_v32, 1  ;;  %v1218_v50 = vperm.slane %v1727_v32, 2  ;;  %v1216_v55 = vperm.slane %v1727_v32, 0 }
  0xb8   : > { %v1220_v56 = vrot.slane %v1217_v47, 4 }
  0xba   : > { %v626_v5 = vld.sshfl [vmem:[#allocation1 + $0x10] sm:$0xff pattern:$0x75316420]  ;;  %v627_v6 = vld.sshfl [vmem:[#allocation1 + $0x18] sm:$0xff pattern:$0x75316420]  ;;  %v1222_v62 = vsel %vm237_vm5, %v1216_v55, %v1220_v56 }
  0xbb   : > { %502 = vrot.lane.b32.xlu2 %v498_v59, %s1568_s24  ;;  %720 = vst [vmem:[#allocation1 + $0x10] ss:$2 sm:$0xff] %v1648_v42  ;;  %v1226_v1 = vmul.f32 %v1222_v62, %v1646_v41  ;;  %v1479_v56 = vld [vmem:[%s1890_s2 + $0x28] sm:$0xff] }
  0xbc   : > { %v625_v10 = vld.sshfl [vmem:[#allocation1 + $0x8] sm:$0xff pattern:$0x75316420]  ;;  %v624_v11 = vld.sshfl [vmem:[#allocation1] sm:$0xff pattern:$0x75316420] }
  0xbd   : > { %506 = vrot.lane.b32.xlu0 %v500_v53, %s1568_s24  ;;  %630 = vrot.lane.b32.xlu1 %v625_v10, %s1573_s7  ;;  %718 = vst [vmem:[#allocation1] ss:$2 sm:$0xff] %v1646_v41  ;;  %v1221_v53 = vrot.slane %v1219_v40, 4 }
  0xbf   : > { %v1223_v59 = vsel %vm237_vm5, %v1218_v50, %v1221_v53 }
  0xc0   : > { %v1227_v0 = vmul.f32 %v1223_v59, %v1648_v42 }
  0xc2   : > { %v723_v22 = vld.sshfl [vmem:[#allocation1 + $0x10] sm:$0xff pattern:$0x75316420]  ;;  %v724_v23 = vld.sshfl [vmem:[#allocation1 + $0x18] sm:$0xff pattern:$0x75316420] }
  0xc3   : > { %632 = vrot.lane.b32.xlu2 %v626_v5, %s1573_s7  ;;  %849 = vst [vmem:[#allocation1 + $0x10] ss:$2 sm:$0xff] %v842_v15 }
  0xc4   : > { %v722_v26 = vld.sshfl [vmem:[#allocation1 + $0x8] sm:$0xff pattern:$0x75316420]  ;;  %v721_v27 = vld.sshfl [vmem:[#allocation1] sm:$0xff pattern:$0x75316420] }
  0xc5   : > { %508 = vrot.lane.b32.xlu0 %v501_v54, %s1568_s24  ;;  %628 = vrot.lane.b32.xlu1 %v624_v11, %s1573_s7  ;;  %847 = vst [vmem:[#allocation1] ss:$2 sm:$0xff] %v841_v19  ;;  %v1097_v54 = vmul.f32 %v1093_v48, %v1646_v41 }
  0xca   : > { %v853_v38 = vld.sshfl [vmem:[#allocation1 + $0x18] sm:$0xff pattern:$0x75316420]  ;;  %v852_v39 = vld.sshfl [vmem:[#allocation1 + $0x10] sm:$0xff pattern:$0x75316420] }
  0xcb   : > { %634 = vrot.lane.b32.xlu2 %v627_v6, %s1573_s7  ;;  %977 = vst [vmem:[#allocation1 + $0x10] ss:$2 sm:$0xff] %v970_v31 }
  0xcc   : > { %v850_v44 = vld.sshfl [vmem:[#allocation1] sm:$0xff pattern:$0x75316420]  ;;  %v851_v45 = vld.sshfl [vmem:[#allocation1 + $0x8] sm:$0xff pattern:$0x75316420] }
  0xcd   : > { %729 = vrot.lane.b32.xlu0 %v723_v22, %s1574_s8  ;;  %731 = vrot.lane.b32.xlu1 %v724_v23, %s1574_s8  ;;  %975 = vst [vmem:[#allocation1] ss:$2 sm:$0xff] %v969_v35 }
  0xd2   : > { %v980_v57 = vld.sshfl [vmem:[#allocation1 + $0x10] sm:$0xff pattern:$0x75316420]  ;;  %v981_v58 = vld.sshfl [vmem:[#allocation1 + $0x18] sm:$0xff pattern:$0x75316420] }
  0xd3   : > { %725 = vrot.lane.b32.xlu2 %v721_v27, %s1574_s8  ;;  %1105 = vst [vmem:[#allocation1 + $0x10] ss:$2 sm:$0xff] %v1098_v49 }
  0xd4   : > { %v979_v60 = vld.sshfl [vmem:[#allocation1 + $0x8] sm:$0xff pattern:$0x75316420]  ;;  %v978_v61 = vld.sshfl [vmem:[#allocation1] sm:$0xff pattern:$0x75316420] }
  0xd5   : > { %727 = vrot.lane.b32.xlu0 %v722_v26, %s1574_s8  ;;  %854 = vrot.lane.b32.xlu1 %v850_v44, %s1575_s9  ;;  %1103 = vst [vmem:[#allocation1] ss:$2 sm:$0xff] %v1097_v54 }
  0xda   : > { %v1109_v2 = vld.sshfl [vmem:[#allocation1 + $0x18] sm:$0xff pattern:$0x75316420]  ;;  %v1108_v3 = vld.sshfl [vmem:[#allocation1 + $0x10] sm:$0xff pattern:$0x75316420] }
  0xdb   : > { %856 = vrot.lane.b32.xlu2 %v851_v45, %s1575_s9  ;;  %1234 = vst [vmem:[#allocation1 + $0x10] ss:$2 sm:$0xff] %v1227_v0  ;;  %v1472_v45 = vld [vmem:[%s1890_s2 + $0x20] sm:$0xff] }
  0xdc   : > { %v1107_v4 = vld.sshfl [vmem:[#allocation1 + $0x8] sm:$0xff pattern:$0x75316420]  ;;  %v1106_v5 = vld.sshfl [vmem:[#allocation1] sm:$0xff pattern:$0x75316420] }
  0xdd   : > { %860 = vrot.lane.b32.xlu0 %v853_v38, %s1575_s9  ;;  %984 = vrot.lane.b32.xlu1 %v979_v60, %s1576_s10  ;;  %1232 = vst [vmem:[#allocation1] ss:$2 sm:$0xff] %v1226_v1  ;;  %v1486_v1 = vld [vmem:[%s1890_s2 + $0x30] sm:$0xff] }
  0xe2   : > { %v1237_v41 = vld.sshfl [vmem:[#allocation1 + $0x10] sm:$0xff pattern:$0x75316420]  ;;  %v1238_v42 = vld.sshfl [vmem:[#allocation1 + $0x18] sm:$0xff pattern:$0x75316420] }
  0xe3   : > { %858 = vrot.lane.b32.xlu2 %v852_v39, %s1575_s9 }
  0xe4   : > { %v1236_v6 = vld.sshfl [vmem:[#allocation1 + $0x8] sm:$0xff pattern:$0x75316420]  ;;  %v1235_v7 = vld.sshfl [vmem:[#allocation1] sm:$0xff pattern:$0x75316420] }
  0xe5   : > { %986 = vrot.lane.b32.xlu1 %v980_v57, %s1576_s10  ;;  %982 = vrot.lane.b32.xlu0 %v978_v61, %s1576_s10 }
  0xeb   : > { %1112 = vrot.lane.b32.xlu2 %v1107_v4, %s1577_s11  ;;  %v1493_v4 = vld [vmem:[%s1890_s2 + $0x38] sm:$0xff] }
  0xed   : > { %988 = vrot.lane.b32.xlu1 %v981_v58, %s1576_s10  ;;  %1114 = vrot.lane.b32.xlu0 %v1108_v3, %s1577_s11 }
  0xf3   : > { %1110 = vrot.lane.b32.xlu2 %v1106_v5, %s1577_s11 }
  0xf5   : > { %1243 = vrot.lane.b32.xlu1 %v1237_v41, %s1578_s12  ;;  %1116 = vrot.lane.b32.xlu0 %v1109_v2, %s1577_s11 }
  0xfb   : > { %1245 = vrot.lane.b32.xlu2 %v1238_v42, %s1578_s12 }
  0xfd   : > { %1241 = vrot.lane.b32.xlu1 %v1236_v6, %s1578_s12  ;;  %1239 = vrot.lane.b32.xlu0 %v1235_v7, %s1578_s12  ;;  %v292_v9 = vpop.permute.xlu2 %291 }
 0x103   : > { %257 = vrot.lane.b32.xlu2 %v1636_v30, %s1569_s25 }
 0x105   : > { %599 = vrot.lane.b32.xlu1 %v1670_v8, %s1565_s21  ;;  %472 = vrot.lane.b32.xlu0 %v1654_v51, %s1579_s13  ;;  %v290_v10 = vpop.permute.xlu2 %289  ;;  %v1445_v8 = vld [vmem:[%s1890_s2 + $0x8] sm:$0xff] }
 0x106   : > { %v296_v11 = vsel %vm248_vm0, %v290_v10, %v292_v9 }
 0x107   : > { %1448 = vmatpush.msk.msra.mxu1 %vm237_vm5, %v296_v11  ;;  %v1500_v11 = vld [vmem:[%s1890_s2 + $0x40] sm:$0xff] }
 0x108   : > { %1449 = vmatmul.msk.f32.vlgmr.msra.gmra.mxu1 %vm298_vm9, %v1445_v8 }
 0x10b   : > { %824 = vrot.lane.b32.xlu2 %v1690_v46, %s1580_s14 }
 0x10d   : > { %1081 = vrot.lane.b32.xlu1 %v1714_v16, %s1575_s9  ;;  %953 = vrot.lane.b32.xlu0 %v1700_v63, %s1574_s8  ;;  %v384_v30 = vpop.permute.xlu2 %383 }
 0x113   : > { %1209 = vrot.lane.b32.xlu2 %v1727_v32, %s1581_s19 }
 0x115   : > { %v294_v51 = vpop.permute.xlu0 %293  ;;  %v503_v12 = vpop.permute.xlu2 %502 }
 0x116   : > { %v288_v46 = vpop.permute.xlu1 %287  ;;  %v297_v13 = vsel %vm248_vm0, %v292_v9, %v294_v51 }
 0x117   : > { %v295_v14 = vsel %vm248_vm0, %v288_v46, %v290_v10  ;;  %1450 = vmatpush.msk.msra.mxu2 %vm237_vm5, %v297_v13 }
 0x118   : > { %1446 = vmatpush.msk.msra.mxu0 %vm237_vm5, %v295_v14  ;;  %1451 = vmatmul.msk.f32.vlgmr.msra.gmra.mxu2 %vm298_vm9, %v1445_v8 }
 0x119   : > { %1447 = vmatmul.msk.f32.vlgmr.msra.gmra.mxu0 %vm298_vm9, %v1445_v8 }
 0x11d   : > { %v633_v63 = vpop.permute.xlu2 %632 }
 0x11f   : > { %v380_v15 = vpop.permute.xlu1 %379  ;;  %v378_v16 = vpop.permute.xlu0 %377 }
 0x120   : > { %v386_v18 = vsel %vm385_vm1, %v378_v16, %v380_v15 }
 0x121   : > { %1452 = vmatpush.msk.msra.mxu3 %vm237_vm5, %v386_v18 }
 0x122   : > { %1453 = vmatmul.msk.f32.vlgmr.msra.gmra.mxu3 %vm298_vm9, %v244_v17 }
 0x125   : > { %v635_v19 = vpop.permute.xlu2 %634 }
 0x126   : > { %v639_v32 = vsel %vm636_vm10, %v633_v63, %v635_v19 }
 0x127   : > { %v382_v20 = vpop.permute.xlu1 %381  ;;  %v505_v21 = vpop.permute.xlu0 %504 }
 0x128   : > { %v387_v22 = vsel %vm385_vm1, %v380_v15, %v382_v20  ;;  %v388_v23 = vsel %vm385_vm1, %v382_v20, %v384_v30  ;;  %v510_v24 = vsel %vm222_vm2, %v503_v12, %v505_v21 }
 0x129   : > { %1454 = vmatpush.msk.msrb.mxu0 %vm237_vm5, %v387_v22  ;;  %1456 = vmatpush.msk.msrb.mxu1 %vm237_vm5, %v388_v23 }
 0x12a   : > { %1459 = vmatpush.msk.msrb.mxu2 %vm237_vm5, %v510_v24  ;;  %1455 = vmatmul.msk.f32.vlgmr.msrb.gmra.mxu0 %vm298_vm9, %v244_v17 }
 0x12b   : > { %1460 = vmatmul.msk.f32.vlgmr.msrb.gmra.mxu2 %vm298_vm9, %v1458_v25  ;;  %1457 = vmatmul.msk.f32.vlgmr.msrb.gmra.mxu1 %vm298_vm9, %v244_v17 }
 0x12d   : > { %v726_v26 = vpop.permute.xlu2 %725 }
 0x12f   : > { %v507_v27 = vpop.permute.xlu0 %506  ;;  %v631_v28 = vpop.permute.xlu1 %630 }
 0x130   : > { %v638_v29 = vsel %vm636_vm10, %v631_v28, %v633_v63  ;;  %v511_v31 = vsel %vm222_vm2, %v505_v21, %v507_v27  ;;  %v1582_v21 = vmov 0  }
 0x131   : > { %1461 = vmatpush.msk.msrb.mxu3 %vm237_vm5, %v511_v31  ;;  %1468 = vmatpush.msk.msra.mxu2 %vm237_vm5, %v638_v29 }
 0x132   : > { %1462 = vmatmul.msk.f32.vlgmr.msrb.gmra.mxu3 %vm298_vm9, %v1458_v25  ;;  %1537 = vset.pattern.permute.xlu1 %v1582_v21 }
 0x133   : > { %1470 = vmatpush.msk.msra.mxu3 %vm237_vm5, %v639_v32  ;;  %1469 = vmatmul.msk.f32.vlgmr.msra.gmra.mxu2 %vm298_vm9, %v1465_v33 }
 0x134   : > { %1538 = vset.pattern.permute.xlu0 %v1582_v21 }
 0x135   : > { %v857_v34 = vpop.permute.xlu2 %856 }
 0x137   : > { %v509_v35 = vpop.permute.xlu0 %508  ;;  %v629_v36 = vpop.permute.xlu1 %628 }
 0x138   : > { %v512_v37 = vsel %vm222_vm2, %v507_v27, %v509_v35  ;;  %v637_v38 = vsel %vm636_vm10, %v629_v36, %v631_v28  ;;  %vm475_vm2 = vcmask 1031168  }
 0x139   : > { %1463 = vmatpush.msk.msra.mxu0 %vm237_vm5, %v512_v37  ;;  %1466 = vmatpush.msk.msra.mxu1 %vm237_vm5, %v637_v38 }
 0x13a   : > { %1464 = vmatmul.msk.f32.vlgmr.msra.gmra.mxu0 %vm298_vm9, %v1458_v25  ;;  %1467 = vmatmul.msk.f32.vlgmr.msra.gmra.mxu1 %vm298_vm9, %v1465_v33 }
 0x13b   : > { %1471 = vmatmul.msk.f32.vlgmr.msra.gmra.mxu3 %vm298_vm9, %v1465_v33 }
 0x13d   : > { %v859_v39 = vpop.permute.xlu2 %858 }
 0x13e   : > { %v864_v55 = vsel %vm862_vm12, %v857_v34, %v859_v39 }
 0x13f   : > { %v730_v40 = vpop.permute.xlu0 %729  ;;  %v732_v43 = vpop.permute.xlu1 %731 }
 0x140   : > { %v736_v44 = vsel %vm733_vm11, %v730_v40, %v732_v43 }
 0x141   : > { %1477 = vmatpush.msk.msrb.mxu2 %vm237_vm5, %v736_v44 }
 0x142   : > { %1478 = vmatmul.msk.f32.vlgmr.msrb.gmra.mxu2 %vm298_vm9, %v1472_v45 }
 0x145   : > { %v1113_v47 = vpop.permute.xlu2 %1112 }
 0x147   : > { %v728_v48 = vpop.permute.xlu0 %727  ;;  %v855_v49 = vpop.permute.xlu1 %854 }
 0x148   : > { %v734_v50 = vsel %vm733_vm11, %v726_v26, %v728_v48  ;;  %v735_v53 = vsel %vm733_vm11, %v728_v48, %v730_v40  ;;  %v863_v54 = vsel %vm862_vm12, %v855_v49, %v857_v34 }
 0x149   : > { %1473 = vmatpush.msk.msrb.mxu0 %vm237_vm5, %v734_v50  ;;  %1475 = vmatpush.msk.msrb.mxu1 %vm237_vm5, %v735_v53  ;;  %v1348_v53 = vld [vmem:[%s1891_s3] sm:$0xff] }
 0x14a   : > { %1480 = vmatpush.msk.msrb.mxu3 %vm237_vm5, %v863_v54  ;;  %1476 = vmatmul.msk.f32.vlgmr.msrb.gmra.mxu1 %vm298_vm9, %v1472_v45 }
 0x14b   : > { %1482 = vmatpush.msk.msra.mxu0 %vm237_vm5, %v864_v55  ;;  %1481 = vmatmul.msk.f32.vlgmr.msrb.gmra.mxu3 %vm298_vm9, %v1479_v56 }
 0x14c   : > { %1474 = vmatmul.msk.f32.vlgmr.msrb.gmra.mxu0 %vm298_vm9, %v1472_v45 }
 0x14d   : > { %v1111_v57 = vpop.permute.xlu2 %1110 }
 0x14e   : > { %v1119_v60 = vsel %vm1118_vm13, %v1111_v57, %v1113_v47 }
 0x14f   : > { %v861_v58 = vpop.permute.xlu0 %860  ;;  %v985_v59 = vpop.permute.xlu1 %984 }
 0x150   : > { %v865_v61 = vsel %vm862_vm12, %v859_v39, %v861_v58 }
 0x151   : > { %1484 = vmatpush.msk.msra.mxu1 %vm237_vm5, %v865_v61 }
 0x152   : > { %1485 = vmatmul.msk.f32.vlgmr.msra.gmra.mxu1 %vm298_vm9, %v1479_v56 }
 0x153   : > { %1494 = vmatpush.msk.msrb.mxu1 %vm237_vm5, %v1119_v60 }
 0x154   : > { %1483 = vmatmul.msk.f32.vlgmr.msra.gmra.mxu0 %vm298_vm9, %v1479_v56 }
 0x155   : > { %v1246_v42 = vpop.permute.xlu2 %1245 }
 0x157   : > { %v987_v62 = vpop.permute.xlu1 %986  ;;  %v983_v0 = vpop.permute.xlu0 %982 }
 0x158   : > { %v992_v2 = vsel %vm990_vm14, %v985_v59, %v987_v62  ;;  %v991_v3 = vsel %vm990_vm14, %v983_v0, %v985_v59 }
 0x159   : > { %1487 = vmatpush.msk.msra.mxu2 %vm237_vm5, %v991_v3  ;;  %1489 = vmatpush.msk.msra.mxu3 %vm237_vm5, %v992_v2 }
 0x15a   : > { %1488 = vmatmul.msk.f32.vlgmr.msra.gmra.mxu2 %vm298_vm9, %v1486_v1  ;;  %1490 = vmatmul.msk.f32.vlgmr.msra.gmra.mxu3 %vm298_vm9, %v1486_v1 }
 0x15b   : > { %1495 = vmatmul.msk.f32.vlgmr.msrb.gmra.mxu1 %vm298_vm9, %v1493_v4 }
 0x15d   : > { %v258_v51 = vpop.permute.xlu2 %257 }
 0x15e   : > { %v259_v63 = vrot.slane %v258_v51, 1 }
 0x15f   : > { %v989_v5 = vpop.permute.xlu1 %988  ;;  %v1115_v41 = vpop.permute.xlu0 %1114 }
 0x160   : > { %v993_v6 = vsel %vm990_vm14, %v987_v62, %v989_v5  ;;  %v1120_v7 = vsel %vm1118_vm13, %v1113_v47, %v1115_v41  ;;  %v261_v16 = vsel %vm260_vm3, %v258_v51, %v259_v63  ;;  %vm1212_vm3 = vcmask 736256  }
 0x161   : > { %1491 = vmatpush.msk.msrb.mxu0 %vm237_vm5, %v993_v6  ;;  %1496 = vmatpush.msk.msrb.mxu2 %vm237_vm5, %v1120_v7  ;;  %v263_v22 = vadd.f32 %v1656_v52, %v261_v16 }
 0x162   : > { %1497 = vmatmul.msk.f32.vlgmr.msrb.gmra.mxu2 %vm298_vm9, %v1493_v4  ;;  %1492 = vmatmul.msk.f32.vlgmr.msrb.gmra.mxu0 %vm298_vm9, %v1486_v1 }
 0x165   : > { %v825_v15 = vpop.permute.xlu2 %824 }
 0x166   : > { %v826_v25 = vrot.slane %v825_v15, 1 }
 0x167   : > { %v1244_v9 = vpop.permute.xlu1 %1243  ;;  %v1117_v10 = vpop.permute.xlu0 %1116 }
 0x168   : > { %v1250_v30 = vsel %vm1247_vm15, %v1244_v9, %v1246_v42  ;;  %v1121_v8 = vsel %vm1118_vm13, %v1115_v41, %v1117_v10  ;;  %v828_v32 = vsel %vm827_vm4, %v825_v15, %v826_v25 }
 0x169   : > { %1498 = vmatpush.msk.msrb.mxu3 %vm237_vm5, %v1121_v8  ;;  %1505 = vmatpush.msk.msra.mxu2 %vm237_vm5, %v1250_v30 }
 0x16a   : > { %1499 = vmatmul.msk.f32.vlgmr.msrb.gmra.mxu3 %vm298_vm9, %v1493_v4  ;;  %1506 = vmatmul.msk.f32.vlgmr.msra.gmra.mxu2 %vm298_vm9, %v1500_v11 }
 0x16d   : > { %v1210_v28 = vpop.permute.xlu2 %1209 }
 0x16e   : > { %v1211_v36 = vrot.slane %v1210_v28, 1 }
 0x16f   : > { %v1242_v12 = vpop.permute.xlu1 %1241  ;;  %v1240_v46 = vpop.permute.xlu0 %1239 }
 0x170   : > { %v1249_v13 = vsel %vm1247_vm15, %v1242_v12, %v1244_v9  ;;  %v1248_v14 = vsel %vm1247_vm15, %v1240_v46, %v1242_v12  ;;  %v1213_v40 = vsel %vm1212_vm3, %v1210_v28, %v1211_v36 }
 0x171   : > { %1501 = vmatpush.msk.msra.mxu0 %vm237_vm5, %v1248_v14  ;;  %1503 = vmatpush.msk.msra.mxu1 %vm237_vm5, %v1249_v13 }
 0x172   : > { %1502 = vmatmul.msk.f32.vlgmr.msra.gmra.mxu0 %vm298_vm9, %v1500_v11  ;;  %1504 = vmatmul.msk.f32.vlgmr.msra.gmra.mxu1 %vm298_vm9, %v1500_v11 }
 0x177   : > { %v600_v17 = vpop.permute.xlu1 %599  ;;  %v473_v18 = vpop.permute.xlu0 %472 }
 0x178   : > { %v601_v19 = vrot.slane %v600_v17, 1  ;;  %v474_v20 = vrot.slane %v473_v18, 1 }
 0x17a   : > { %v476_v23 = vsel %vm475_vm2, %v473_v18, %v474_v20  ;;  %v602_v26 = vsel %vm248_vm0, %v600_v17, %v601_v19 }
 0x17b   : > { %v478_v24 = vadd.f32 %v476_v23, %v263_v22 }
 0x17d   : > { %v604_v27 = vadd.f32 %v602_v26, %v478_v24 }
 0x17f   : > { %v1082_v29 = vpop.permute.xlu1 %1081  ;;  %v954_v31 = vpop.permute.xlu0 %953  ;;  %v830_v35 = vadd.f32 %v828_v32, %v604_v27 }
 0x180   : > { %v1083_v33 = vrot.slane %v1082_v29, 1  ;;  %v955_v34 = vrot.slane %v954_v31, 1 }
 0x182   : > { %v956_v37 = vsel %vm733_vm11, %v954_v31, %v955_v34  ;;  %v1084_v52 = vsel %vm862_vm12, %v1082_v29, %v1083_v33 }
 0x183   : > { %v958_v38 = vadd.f32 %v956_v37, %v830_v35 }
 0x185   : > { %v1086_v39 = vadd.f32 %v1084_v52, %v958_v38  ;;  %v345_v56 = vpop.f32.mrf.mxu1 }
 0x187   : > { %v1215_v43 = vadd.f32 %v1213_v40, %v1086_v39 }
 0x189   : > { %v1323_v44 = vadd.f32 1.0, %v1215_v43 }
 0x18b   : > { %1555 = vrcp.f32 %v1323_v44 }
 0x191   : > { %v1556_v45 = vpop.eup %1555 }
 0x192   : > { %v1325_v47 = vmul.f32 9.0, %v1556_v45 }
 0x194   : > { %v1329_v48 = vperm.slane %v1325_v47, 2  ;;  %v1328_v49 = vperm.slane %v1325_v47, 1  ;;  %v1327_v50 = vperm.slane %v1325_v47, 0  ;;  %v1330_v54 = vperm.slane %v1325_v47, 3 }
 0x196   : > { %1335 = vrot.lane.b32.xlu2 %v1329_v48, %s1566_s22  ;;  %1333 = vrot.lane.b32.xlu1 %v1328_v49, %s1566_s22  ;;  %v325_v55 = vpop.f32.mrf.mxu0 }
 0x197   : > { %1331 = vrot.lane.b32.xlu0 %v1327_v50, %s1566_s22 }
 0x19b   : > { %v365_v57 = vpop.f32.mrf.mxu2 }
 0x19e   : > { %1351 = vperm.xlu1 %1537, %v1348_v53  }
 0x19f   : > { %1337 = vrot.lane.b32.xlu0 %v1330_v54, %s1566_s22  ;;  %s1510_s22 = smul.u32 24, %s1894_s16 }
 0x1a1   : > { %s214_s17 = scalar_lea.vmem %s1892_s4, %s1510_s22 }
 0x1a5   : > { %v415_v60 = vpop.f32.mrf.mxu3 }
 0x1a6   : > { %v416_v42 = vadd.f32 %v415_v60, %v325_v55 }
 0x1a7   : > { %v435_v58 = vpop.f32.mrf.mxu0 }
 0x1a8   : > { %v455_v59 = vpop.f32.mrf.mxu1  ;;  %v436_v6 = vadd.f32 %v435_v58, %v345_v56 }
 0x1a9   : > { %v456_v8 = vadd.f32 %v455_v59, %v365_v57 }
 0x1ae   : > { %v539_v61 = vpop.f32.mrf.mxu2 }
 0x1af   : > { %v582_v10 = vadd.f32 %v539_v61, %v416_v42 }
 0x1b5   : > { %v559_v1 = vpop.f32.mrf.mxu3 }
 0x1b6   : > { %v686_v2 = vpop.f32.mrf.mxu2  ;;  %v583_v11 = vadd.f32 %v559_v1, %v436_v6 }
 0x1b7   : > { %v579_v62 = vpop.f32.mrf.mxu0  ;;  %v666_v0 = vpop.f32.mrf.mxu1 }
 0x1b8   : > { %v709_v51 = vadd.f32 %v666_v0, %v582_v10  ;;  %v710_v12 = vadd.f32 %v686_v2, %v583_v11  ;;  %v584_v13 = vadd.f32 %v579_v62, %v456_v8 }
 0x1be   : > { %v706_v5 = vpop.f32.mrf.mxu3 }
 0x1bf   : > { %v711_v15 = vadd.f32 %v706_v5, %v584_v13 }
 0x1c5   : > { %v803_v41 = vpop.f32.mrf.mxu2 }
 0x1c6   : > { %v808_v21 = vadd.f32 %v803_v41, %v711_v15 }
 0x1c7   : > { %v783_v4 = vpop.f32.mrf.mxu1 }
 0x1c8   : > { %v807_v63 = vadd.f32 %v783_v4, %v710_v12 }
 0x1c9   : > { %v763_v3 = vpop.f32.mrf.mxu0 }
 0x1ca   : > { %v806_v14 = vadd.f32 %v763_v3, %v709_v51 }
 0x1ce   : > { %v892_v30 = vpop.f32.mrf.mxu3 }
 0x1cf   : > { %v932_v9 = vpop.f32.mrf.mxu1  ;;  %v935_v19 = vadd.f32 %v892_v30, %v806_v14 }
 0x1d0   : > { %v937_v25 = vadd.f32 %v932_v9, %v808_v21 }
 0x1d1   : > { %v912_v7 = vpop.f32.mrf.mxu0 }
 0x1d2   : > { %v936_v20 = vadd.f32 %v912_v7, %v807_v63 }
 0x1d8   : > { %v1148_v17 = vpop.f32.mrf.mxu1 }
 0x1dd   : > { %v1020_v46 = vpop.f32.mrf.mxu2  ;;  %v1040_v18 = vpop.f32.mrf.mxu3 }
 0x1de   : > { %v1063_v23 = vadd.f32 %v1020_v46, %v935_v19  ;;  %v1064_v24 = vadd.f32 %v1040_v18, %v936_v20 }
 0x1df   : > { %v1060_v16 = vpop.f32.mrf.mxu0 }
 0x1e0   : > { %v1191_v31 = vadd.f32 %v1148_v17, %v1063_v23  ;;  %v1065_v35 = vadd.f32 %v1060_v16, %v937_v25 }
 0x1e5   : > { %v1168_v22 = vpop.f32.mrf.mxu2 }
 0x1e6   : > { %v1192_v32 = vadd.f32 %v1168_v22, %v1064_v24 }
 0x1ed   : > { %v1188_v33 = vpop.f32.mrf.mxu3  ;;  %v1317_v40 = vpop.f32.mrf.mxu2 }
 0x1ee   : > { %v1193_v39 = vadd.f32 %v1188_v33, %v1065_v35 }
 0x1ef   : > { %v1277_v28 = vpop.f32.mrf.mxu0  ;;  %v1297_v29 = vpop.f32.mrf.mxu1 }
 0x1f0   : > { %v1336_v34 = vpop.permute.xlu2 %1335  ;;  %v1320_v38 = vadd.f32 %v1277_v28, %v1191_v31  ;;  %v1321_v52 = vadd.f32 %v1297_v29, %v1192_v32  ;;  %v1322_v50 = vadd.f32 %v1317_v40, %v1193_v39 }
 0x208   : > { %v1334_v26 = vpop.permute.xlu1 %1333 }
 0x209   : > { %v1332_v27 = vpop.permute.xlu0 %1331  ;;  %v1340_v36 = vsel %vm385_vm1, %v1334_v26, %v1336_v34 }
 0x20a   : > { %v1339_v37 = vsel %vm385_vm1, %v1332_v27, %v1334_v26  ;;  %v1346_v43 = vmul.f32 %v1340_v36, %v1321_v52 }
 0x20b   : > { %v1345_v44 = vmul.f32 %v1339_v37, %v1320_v38 }
 0x210   : > { %v1352_v45 = vpop.permute.xlu1 %1351 }
 0x211   : > { %v1354_v47 = vadd.f32 %v1352_v45, %v1345_v44  ;;  %v1355_v48 = vadd.f32 %v1352_v45, %v1346_v43  ;;  %v1338_v49 = vpop.permute.xlu0 %1337 }
 0x212   : > { %v1341_v53 = vsel %vm385_vm1, %v1336_v34, %v1338_v49 }
 0x213   : > { %vm1357_vm0 = vcmp.ge.f32.partialorder %v1354_v47, 0.0  ;;  %vm1358_vm5 = vcmp.ge.f32.partialorder %v1355_v48, 0.0  ;;  %v1360_v54 = vmul.f32 0.1, %v1354_v47  ;;  %v1361_v55 = vmul.f32 0.1, %v1355_v48 }
 0x214   : > { %v1347_v56 = vmul.f32 %v1341_v53, %v1322_v50 }
 0x215   : > { %v1363_v57 = vsel %vm1357_vm0, %v1354_v47, %v1360_v54  ;;  %v1364_v58 = vsel %vm1358_vm5, %v1355_v48, %v1361_v55 }
 0x216   : > { %1366 = vst [vmem:[%s214_s17] sm:$0xff] %v1363_v57  ;;  %v1356_v59 = vadd.f32 %v1352_v45, %v1347_v56 }
 0x217   : > { %1367 = vst [vmem:[%s214_s17 + $0x8] sm:$0xff] %v1364_v58 }
 0x218   : > { %vm1359_vm6 = vcmp.ge.f32.partialorder %v1356_v59, 0.0  ;;  %v1362_v60 = vmul.f32 0.1, %v1356_v59 }
 0x21a   : > { %v1365_v61 = vsel %vm1359_vm6, %v1356_v59, %v1362_v60 }
 0x21b   : > { %1368 = vst [vmem:[%s214_s17 + $0x10] sm:$0xff] %v1365_v61 }
 0x21c PF: > { %s14_s15 = sadd.s32 1, %s1563_s15  }
 0x21d   : > { %p11_p4 = scmp.ge.s32.totalorder %s14_s15, 4  }
 0x21f   :  { %13 = sbr.rel (!%p11_p4) target bundleno = 1 (0x1), region = 86 }

</bundles_post_ra>
